<compile_context>
chip_gen: v7x
topology: tpu7x:2x2x1
jax: 0.10.0
libtpu: 0.0.40
codegen_flags: <defaults>
</compile_context>

<pallas_src>
import math

import jax
import jax.numpy as jnp
from jax.experimental import pallas as pl
from jax.experimental.pallas import tpu as pltpu

LANES = 128


def diagonal_linear_kernel(x_ref, diag_ref, o_ref):
    # Clamp the resident diagonal row, cast to the input dtype (avoid promoting
    # the whole tile to f32), and apply as a per-lane scale over the row tile.
    d = jnp.clip(diag_ref[...], -0.7, 0.7).astype(x_ref.dtype)   # (1, D_eff)
    o_ref[...] = (x_ref[...] * d).astype(o_ref.dtype)


def _choose_row_tile(n_rows, d_eff, itemsize):
    """Byte-targeted row tile.

    Targets ~4 MiB of x per block (x + out, double-buffered -> ~16 MiB VMEM),
    while keeping >= 4 grid steps (preferably an even count for v7x megacore)
    and a dtype-appropriate sublane multiple.
    """
    sublane = max(8, 32 // max(int(itemsize), 1))   # f32: 8, bf16: 16, int8: 32
    if n_rows <= sublane:
        return int(n_rows)                           # full-extent block (always legal)

    row_bytes = d_eff * itemsize
    target_bytes = 4 * 1024 * 1024                   # ~4 MiB of x per block
    tb = max(sublane, target_bytes // max(row_bytes, 1))
    # Prefer >= 4 grid steps so pipelining / TC sharding have work.
    tb = min(tb, max(sublane, pl.cdiv(n_rows, 4)))
    tb = max(sublane, (tb // sublane) * sublane)

    # Prefer an even step count (v7x shards the 'parallel' axis across 2 TCs).
    steps = pl.cdiv(n_rows, tb)
    if steps > 1 and steps % 2 == 1:
        cand = pl.cdiv(n_rows, steps + 1)
        cand = max(sublane, ((cand + sublane - 1) // sublane) * sublane)
        if pl.cdiv(n_rows, cand) % 2 == 0:
            tb = cand
    return int(tb)


def _diagonal_linear_2d(x2d, diag_row):
    """x2d: (R, D_eff), diag_row: (1, D_eff) -> (R, D_eff) elementwise scale."""
    R, D_eff = x2d.shape
    tb = _choose_row_tile(R, D_eff, x2d.dtype.itemsize)
    grid = (pl.cdiv(R, tb),)
    return pl.pallas_call(
        diagonal_linear_kernel,
        out_shape=jax.ShapeDtypeStruct((R, D_eff), x2d.dtype),
        grid_spec=pltpu.PrefetchScalarGridSpec(
            num_scalar_prefetch=0,
            grid=grid,
            in_specs=[
                pl.BlockSpec((tb, D_eff), lambda i: (i, 0)),
                pl.BlockSpec((1, D_eff), lambda i: (0, 0)),   # diag stays resident
            ],
            out_specs=pl.BlockSpec((tb, D_eff), lambda i: (i, 0)),
        ),
        compiler_params=pltpu.CompilerParams(
            dimension_semantics=("parallel",),                # pure elementwise
            vmem_limit_bytes=32 * 1024 * 1024,                # safe on v5e/v6e/v7x
        ),
    )(x2d, diag_row)


def diagonal_linear(x, diagonal, *, min_pallas_bytes=512 * 1024):
    """x: (..., D), diagonal: (D,) -> x @ diag(clamp(diagonal, -0.7, 0.7))."""
    orig_shape = x.shape
    D = orig_shape[-1]

    # Tiny-input fast path: fixed pallas_call/DMA setup cost (several us) would
    # dominate; XLA fuses this trivially.
    if x.size * x.dtype.itemsize < min_pallas_bytes:
        return x * jnp.clip(diagonal, -0.7, 0.7).astype(x.dtype)

    x2d = x.reshape(-1, D)
    B = x2d.shape[0]

    if D >= LANES:
        # Full-extent last dim as the lane block; only the trailing partial
        # 128-lane group (if any) uses masked stores — far cheaper than an
        # extra pad/slice HBM pass.
        out = _diagonal_linear_2d(x2d, diagonal.reshape(1, D))
    else:
        # Small D: fold k rows into one lane-dense row of width lcm(D, 128),
        # with the diagonal tiled k times so each folded row sees its scale.
        # Pad the batch (adds < k rows) rather than inflating the lane axis.
        fold = math.lcm(D, LANES)
        k = fold // D
        pad_rows = (-B) % k
        x_f = jnp.pad(x2d, ((0, pad_rows), (0, 0))) if pad_rows else x2d
        rows_f = (B + pad_rows) // k
        x_f = x_f.reshape(rows_f, fold)
        diag_f = jnp.tile(diagonal, k).reshape(1, fold)
        out = _diagonal_linear_2d(x_f, diag_f).reshape(B + pad_rows, D)
        if pad_rows:
            out = out[:B]

    return out.reshape(orig_shape)


if __name__ == "__main__":
    latent_dim = 32
    batch = 8

    # Deterministic parameter init matching the module: ones(latent_dim) - 0.8
    diagonal = jnp.ones((latent_dim,), dtype=jnp.float32) - 0.8

    key = jax.random.PRNGKey(0)
    x = jax.random.normal(key, (batch, latent_dim), dtype=jnp.float32)

    # Force the Pallas path even at this tiny size so the kernel is exercised.
    out = diagonal_linear(x, diagonal, min_pallas_bytes=0)
    out = jax.block_until_ready(out)

    ref = x @ jnp.diag(jnp.clip(diagonal, -0.7, 0.7))
    assert out.shape == (batch, latent_dim)
    assert jnp.allclose(out, ref, atol=1e-6), "pallas path mismatch vs reference"

    # Default wrapper (takes the small-input XLA fast path at this size).
    out2 = jax.block_until_ready(diagonal_linear(x, diagonal))
    assert jnp.allclose(out2, ref, atol=1e-6), "fast path mismatch vs reference"

    print("KERNEL_OK")
</pallas_src>

<mosaic_0001>
module attributes {stable_mosaic.version = 11 : i64} {
  func.func @diagonal_linear_kernel(%arg0: i32, %arg1: memref<2x128xf32, #tpu.memory_space<vmem>>, %arg2: memref<1x128xf32, #tpu.memory_space<vmem>>, %arg3: memref<2x128xf32, #tpu.memory_space<vmem>>) attributes {dimension_semantics = [#tpu.dimension_semantics<parallel>], iteration_bounds = array<i64: 1>, scalar_prefetch = 0 : i64, scratch_operands = 0 : i64, tpu.core_type = #tpu.core_type<tc>, window_params = [{transform_indices = @transform_0, window_bounds = array<i64: 2, 128>}, {pipeline_mode = #tpu.pipeline_mode<synchronous>, transform_indices = @transform_1, window_bounds = array<i64: 1, 128>}, {transform_indices = @transform_2, window_bounds = array<i64: 2, 128>}]} {
    %c0 = arith.constant 0 : index
    %c0_0 = arith.constant 0 : index
    %0 = vector.load %arg2[%c0, %c0_0] : memref<1x128xf32, #tpu.memory_space<vmem>>, vector<1x128xf32>
    %cst = arith.constant -0.699999988 : f32
    %cst_1 = arith.constant 0.699999988 : f32
    %1 = vector.broadcast %cst : f32 to vector<1x128xf32>
    %2 = arith.maximumf %1, %0 : vector<1x128xf32>
    %3 = vector.broadcast %cst_1 : f32 to vector<1x128xf32>
    %4 = arith.minimumf %3, %2 : vector<1x128xf32>
    %c0_2 = arith.constant 0 : index
    %c0_3 = arith.constant 0 : index
    %5 = vector.load %arg1[%c0_2, %c0_3] : memref<2x128xf32, #tpu.memory_space<vmem>>, vector<2x128xf32>
    %6 = vector.broadcast %4 : vector<1x128xf32> to vector<2x128xf32>
    %7 = arith.mulf %5, %6 : vector<2x128xf32>
    %c0_4 = arith.constant 0 : index
    %c0_5 = arith.constant 0 : index
    %8 = vector.load %arg3[%c0_4, %c0_5] : memref<2x128xf32, #tpu.memory_space<vmem>>, vector<2x128xf32>
    tpu.vector_store %arg3[%c0_4, %c0_5], %7 {strides = array<i32>} : memref<2x128xf32, #tpu.memory_space<vmem>>, vector<2x128xf32>,
    return
  }
  func.func @transform_0(%arg0: i32) -> (i32, i32) {
    %c0_i32 = arith.constant 0 : i32
    %c0_i32_0 = arith.constant 0 : i32
    return %arg0, %c0_i32 : i32, i32
  }
  func.func @transform_1(%arg0: i32) -> (i32, i32) {
    %c0_i32 = arith.constant 0 : i32
    %c0_i32_0 = arith.constant 0 : i32
    %c0_i32_1 = arith.constant 0 : i32
    return %c0_i32, %c0_i32_0 : i32, i32
  }
  func.func @transform_2(%arg0: i32) -> (i32, i32) {
    %c0_i32 = arith.constant 0 : i32
    %c0_i32_0 = arith.constant 0 : i32
    return %arg0, %c0_i32 : i32, i32
  }
}

</mosaic_0001>

<bundles_post_ra>
// kernel: tpu_custom_call.1
= control target key start
LH: loop header
LB: loop body
LE: loop exit
PB: predicated region body
PF: predicated region fallthrough
CT: control target
= control target key end

     0   :  { %7 = vsyncpa [#allocation3], 0  ;;  %s146_s0 = inlined_call_operand.hbm [shape: f32[2,128], index: 0, kind: input, shape index: {}]   ;;  %s147_s1 = inlined_call_operand.vmem [shape: f32[1,128], index: 1, kind: input, shape index: {}]   ;;  %s148_s2 = inlined_call_operand.hbm [shape: f32[2,128], index: 2, kind: output, shape index: {}]  }
   0x1   :  { %8 = vsyncpa [#allocation4], 0  ;;  %s102_s9 = smov [#allocation2]   ;;  %s54_s13 = scalar_lea.hbm %s146_s0, 32 }
   0x2   :  { %s15_s10 = sshll.u32 %s102_s9, 4  ;;  %p55_p0 = scmp.ne.s32.totalorder %s146_s0, %s54_s13  ;;  %s16_s10 = int_to_ptr.vmem [resolvable:$true] %s15_s10 }
   0x3   :  { %p58_p1 = scmp.lt.u32.totalorder %s54_s13, %s146_s0 }
   0x5   :  { %p60_p2 = pnand %p58_p1, %p55_p0 }
   0x7   :  { %63 = shalt.err (!%p60_p2)
}
   0x8   :  { %s64_s18 = scalar_lea.vmem %s16_s10, 32  ;;  %p69_p4 = scmp.lt.s32.totalorder %s16_s10, %s16_s10 }
   0x9   :  { %p65_p3 = scmp.ne.s32.totalorder %s16_s10, %s64_s18  ;;  %p70_p5 = scmp.lt.s32.totalorder %s64_s18, %s64_s18 }
   0xb   :  { %p71_p6 = por %p70_p5, %p69_p4 }
   0xd   :  { %p72_p7 = pnand %p71_p6, %p65_p3 }
   0xf   :  { %75 = shalt.err (!%p72_p7)
}
  0x10   :  { %18 = dma.hbm_to_vmem [thread:$0]  %s146_s0, 32, %s16_s10, [#allocation3]  }
  0x11   :  { %98 = dma.done.wait [#allocation3], 32  }
  0x12   :  { %99 = vsyncadd [#allocation3], 4294967264  ;;  %v29_v0 = vlaneseq  ;;  %v24_v3 = vld [vmem:[%s147_s1] sm:$0x1]  ;;  %s103_s23 = smov [#allocation5]  }
  0x13   :  { %v51_v4 = vclamps-f32 %v24_v3, 0.7  ;;  %v27_v5 = vld [vmem:[#allocation2] sm:$0x3]  ;;  %s42_s24 = sshll.u32 %s103_s23, 4  ;;  %s43_s24 = int_to_ptr.vmem [resolvable:$true] %s42_s24 }
  0x14   :  { %v30_v1 = vshrl.u32 %v29_v0, 7  ;;  %s76_s25 = scalar_lea.vmem %s43_s24, 32  ;;  %p81_p9 = scmp.lt.s32.totalorder %s43_s24, %s43_s24 }
  0x15   :  { %p77_p8 = scmp.ne.s32.totalorder %s43_s24, %s76_s25  ;;  %p82_p10 = scmp.lt.s32.totalorder %s76_s25, %s76_s25 }
  0x16   :  { %v31_v2 = vsub.s32 0, %v30_v1 }
  0x17   :  { %p83_p11 = por %p82_p10, %p81_p9 }
  0x18   :  { %v32_v6 = vrot.slane %v51_v4, %v31_v2 }
  0x19   :  { %p84_p12 = pnand %p83_p11, %p77_p8 }
  0x1a   :  { %v34_v7 = vmul.f32 %v32_v6, %v27_v5 }
  0x1c   :  { %35 = vst [vmem:[#allocation5] sm:$0x3] %v34_v7 }
  0x1d   :  { %87 = shalt.err (!%p84_p12)
}
  0x1e   :  { %s88_s27 = scalar_lea.hbm %s148_s2, 32 }
  0x1f   :  { %p89_p13 = scmp.ne.s32.totalorder %s148_s2, %s88_s27  ;;  %p92_p0 = scmp.lt.u32.totalorder %s88_s27, %s148_s2 }
  0x21   :  { %p94_p1 = pnand %p92_p0, %p89_p13 }
  0x23   :  { %97 = shalt.err (!%p94_p1)
}
  0x24   :  { %45 = dma.vmem_to_hbm [thread:$0]  %s43_s24, 32, %s148_s2, [#allocation4]  }
  0x25   :  { %100 = dma.done.wait [#allocation4], 32  }
  0x26   :  { %101 = vsyncadd [#allocation4], 4294967264 }
  0x27   :  { %49 = vsyncpa [#allocation3], 1 }
  0x28   :  { %50 = vsyncpa [#allocation4], 1 }

</bundles_post_ra>
